<compile_context>
chip_gen: v7x
topology: tpu7x:2x2x1
jax: 0.10.0
libtpu: 0.0.40
codegen_flags: <defaults>
</compile_context>

<pallas_src>
from functools import partial

import jax
import jax.numpy as jnp
import numpy as np
from jax import lax
from jax.experimental import pallas as pl
from jax.experimental.pallas import tpu as pltpu


def make_critic_kernel(n_layers, relu_alpha):
    """Kernel ref order: x, (W_l, b_l) * n_layers, wc, bc, out."""

    def leaky(x):
        return jnp.where(x > 0, x, relu_alpha * x)

    def kernel(x_ref, *refs):
        # x_ref: (TB, D_in) f32 batch-major block (no wrapper-side transpose).
        # First layer contracts W dim 1 against x dim 1 -> result is already
        # feature-major (out0, TB) with the batch on lanes.
        w0_ref, b0_ref = refs[0], refs[1]
        h = lax.dot_general(
            w0_ref[...], x_ref[...],
            dimension_numbers=(((1,), (1,)), ((), ())),
            preferred_element_type=jnp.float32)
        h = leaky(h + b0_ref[...])

        for l in range(1, n_layers):
            w_ref = refs[2 * l]          # (out_l, in_l) block-diag, f32
            b_ref = refs[2 * l + 1]      # (out_l, 1) f32
            y = jnp.dot(w_ref[...], h, preferred_element_type=jnp.float32)
            h = leaky(y + b_ref[...])

        wc_ref = refs[2 * n_layers]       # (2H, 1) combine weight (column)
        bc_ref = refs[2 * n_layers + 1]   # (1, 1)
        out_ref = refs[2 * n_layers + 2]  # (1, TB) f32 -> lane-dense store

        # Width-1 projection: VPU multiply + sublane reduction (no MXU dot).
        q = jnp.sum(h * wc_ref[...], axis=0, keepdims=True)
        out_ref[...] = (q + bc_ref[...]).astype(out_ref.dtype)

    return kernel


def pack_critic_params(params):
    """Block-diagonal fusion of the two branches.

    Call ONCE (outside the training/eval step) and reuse the returned device
    arrays; do not re-pack per forward.
    """
    state_layers = params["state"]    # list of (W (out,in), b (out,))
    action_layers = params["action"]
    assert len(state_layers) == len(action_layers), (
        "state/action branch depth mismatch")
    assert state_layers[-1][0].shape[0] == action_layers[-1][0].shape[0], (
        "last hidden widths of state/action branches must match")

    fused = []
    for (ws, bs), (wa, ba) in zip(state_layers, action_layers):
        ws = np.asarray(ws, np.float32)
        wa = np.asarray(wa, np.float32)
        bs = np.asarray(bs, np.float32).reshape(-1)
        ba = np.asarray(ba, np.float32).reshape(-1)
        out_s, in_s = ws.shape
        out_a, in_a = wa.shape
        w = np.zeros((out_s + out_a, in_s + in_a), np.float32)
        w[:out_s, :in_s] = ws
        w[out_s:, in_s:] = wa
        b = np.concatenate([bs, ba]).reshape(-1, 1)
        fused.append((jnp.asarray(w), jnp.asarray(b)))

    wc, bc = params["combine"]                                   # (1, 2H), (1,)
    wc_col = jnp.asarray(np.asarray(wc, np.float32).reshape(-1, 1))   # (2H, 1)
    bc_s = jnp.asarray(np.asarray(bc, np.float32).reshape(1, 1))      # (1, 1)
    return {"layers": fused, "wc": wc_col, "bc": bc_s}


def _choose_batch_tile(B, max_tile=1024):
    """Large tiles to amortize grid-step overhead; grid >= 2 for v7x megacore."""
    def rup128(n):
        return ((n + 127) // 128) * 128
    if B <= 128:
        return 128
    # Split the batch over >= 2 grid steps (feeds both v7x TensorCores via the
    # "parallel" axis), but cap the tile so very large batches still use big,
    # step-amortizing tiles (512-1024 is in the 85%+ roofline regime).
    return max(128, min(rup128((B + 1) // 2), max_tile))


@partial(jax.jit, static_argnames=("relu_alpha", "batch_tile"))
def critic_forward(states, actions, packed, *, relu_alpha, batch_tile=None):
    """Forward pass of CriticNetwork as one Pallas kernel, gridded over batch."""
    B = states.shape[0]
    fused = packed["layers"]
    wc_col = packed["wc"]
    bc_s = packed["bc"]
    n_layers = len(fused)

    if batch_tile is None:
        batch_tile = _choose_batch_tile(B)
    b_pad = ((B + batch_tile - 1) // batch_tile) * batch_tile

    # Fused batch-major input: [states | actions], padded along batch only.
    # Under jit these fuse into one tiny prologue before the pallas_call.
    x = jnp.concatenate([states, actions], axis=1).astype(jnp.float32)  # (B, D)
    if b_pad != B:
        x = jnp.pad(x, ((0, b_pad - B), (0, 0)))
    d_in = x.shape[1]

    flat_inputs = [x]
    in_specs = [pl.BlockSpec((batch_tile, d_in), lambda i: (i, 0))]
    for w, b in fused:
        flat_inputs += [w, b]
        in_specs += [pl.BlockSpec(w.shape, lambda i: (0, 0)),
                     pl.BlockSpec(b.shape, lambda i: (0, 0))]
    flat_inputs += [wc_col, bc_s]
    in_specs += [pl.BlockSpec(wc_col.shape, lambda i: (0, 0)),
                 pl.BlockSpec(bc_s.shape, lambda i: (0, 0))]

    kernel = make_critic_kernel(n_layers, relu_alpha)

    flops = int(2 * b_pad * (sum(int(w.shape[0]) * int(w.shape[1])
                                 for w, _ in fused)
                             + int(wc_col.shape[0])))
    bytes_accessed = int(sum(int(a.size) * a.dtype.itemsize for a in flat_inputs)
                         + b_pad * 4)

    out = pl.pallas_call(
        kernel,
        out_shape=jax.ShapeDtypeStruct((1, b_pad), jnp.float32),
        grid=(b_pad // batch_tile,),
        in_specs=in_specs,
        out_specs=pl.BlockSpec((1, batch_tile), lambda i: (0, i)),
        compiler_params=pltpu.CompilerParams(
            dimension_semantics=("parallel",)),
        cost_estimate=pl.CostEstimate(flops=flops, transcendentals=0,
                                      bytes_accessed=bytes_accessed),
    )(*flat_inputs)

    return out[0, :B].reshape(B, 1)


def init_params(key, state_size, action_size, hidden_layer_sizes):
    """Deterministic synthetic init, PyTorch nn.Linear layout: W (out,in), b (out,)."""

    def linear(key, fan_in, fan_out):
        k1, k2 = jax.random.split(key)
        bound = 1.0 / np.sqrt(fan_in)
        w = jax.random.uniform(k1, (fan_out, fan_in), jnp.float32, -bound, bound)
        b = jax.random.uniform(k2, (fan_out,), jnp.float32, -bound, bound)
        return w, b

    n = len(hidden_layer_sizes[0]) + len(hidden_layer_sizes[1]) + 1
    keys = jax.random.split(key, n)
    ki = 0

    state_layers = []
    in_size = state_size
    for size in hidden_layer_sizes[0]:
        state_layers.append(linear(keys[ki], in_size, size))
        ki += 1
        in_size = size

    action_layers = []
    in_size = action_size
    for size in hidden_layer_sizes[1]:
        action_layers.append(linear(keys[ki], in_size, size))
        ki += 1
        in_size = size

    combine = linear(keys[ki], in_size * 2, 1)   # W: (1, 2H), b: (1,)
    return {"state": state_layers, "action": action_layers, "combine": combine}


def reference_forward(states, actions, params, relu_alpha):
    def leaky(x):
        return jnp.where(x > 0, x, relu_alpha * x)

    ns = states
    for w, b in params["state"]:
        ns = leaky(ns @ w.T + b)
    na = actions
    for w, b in params["action"]:
        na = leaky(na @ w.T + b)
    net = jnp.concatenate([ns, na], axis=1)
    wc, bc = params["combine"]
    return net @ wc.T + bc


if __name__ == "__main__":
    # MountainCarContinuous-style critic: 2-D state, 1-D action.
    STATE_SIZE = 2
    ACTION_SIZE = 1
    HIDDEN = [[32, 32], [32, 32]]
    RELU_ALPHA = 0.01
    DROPOUT = 0.0          # unused in the PyTorch forward; kept for parity
    BATCH = 300            # -> batch_tile 256, grid of 2 (both v7x cores busy)

    key = jax.random.PRNGKey(0)
    kp, ks, ka = jax.random.split(key, 3)

    params = init_params(kp, STATE_SIZE, ACTION_SIZE, HIDDEN)
    states = jax.random.normal(ks, (BATCH, STATE_SIZE), jnp.float32)
    actions = jax.random.normal(ka, (BATCH, ACTION_SIZE), jnp.float32)

    # Pack ONCE (hoisted out of the forward path) and reuse.
    packed = pack_critic_params(params)

    q_ref = reference_forward(states, actions, params, RELU_ALPHA)

    q = critic_forward(states, actions, packed, relu_alpha=RELU_ALPHA)
    q = jax.block_until_ready(q)
    assert q.shape == (BATCH, 1)
    np.testing.assert_allclose(np.asarray(q), np.asarray(q_ref),
                               rtol=1e-5, atol=1e-5)

    # Exercise the small-batch (single 128 tile) path too.
    q_small = critic_forward(states[:64], actions[:64], packed,
                             relu_alpha=RELU_ALPHA)
    q_small = jax.block_until_ready(q_small)
    np.testing.assert_allclose(np.asarray(q_small), np.asarray(q_ref[:64]),
                               rtol=1e-5, atol=1e-5)

    print("KERNEL_OK")
</pallas_src>

<mosaic_0001>
module attributes {stable_mosaic.version = 11 : i64} {
  func.func @kernel(%arg0: i32, %arg1: memref<256x3xf32, #tpu.memory_space<vmem>>, %arg2: memref<64x3xf32, #tpu.memory_space<vmem>>, %arg3: memref<64x1xf32, #tpu.memory_space<vmem>>, %arg4: memref<64x64xf32, #tpu.memory_space<vmem>>, %arg5: memref<64x1xf32, #tpu.memory_space<vmem>>, %arg6: memref<64x1xf32, #tpu.memory_space<vmem>>, %arg7: memref<1x1xf32, #tpu.memory_space<vmem>>, %arg8: memref<1x256xf32, #tpu.memory_space<vmem>>) attributes {dimension_semantics = [#tpu.dimension_semantics<parallel>], iteration_bounds = array<i64: 2>, scalar_prefetch = 0 : i64, scratch_operands = 0 : i64, tpu.core_type = #tpu.core_type<tc>, window_params = [{transform_indices = @transform_0, window_bounds = array<i64: 256, 3>}, {pipeline_mode = #tpu.pipeline_mode<synchronous>, transform_indices = @transform_1, window_bounds = array<i64: 64, 3>}, {pipeline_mode = #tpu.pipeline_mode<synchronous>, transform_indices = @transform_2, window_bounds = array<i64: 64, 1>}, {pipeline_mode = #tpu.pipeline_mode<synchronous>, transform_indices = @transform_3, window_bounds = array<i64: 64, 64>}, {pipeline_mode = #tpu.pipeline_mode<synchronous>, transform_indices = @transform_4, window_bounds = array<i64: 64, 1>}, {pipeline_mode = #tpu.pipeline_mode<synchronous>, transform_indices = @transform_5, window_bounds = array<i64: 64, 1>}, {pipeline_mode = #tpu.pipeline_mode<synchronous>, transform_indices = @transform_6, window_bounds = array<i64: 1, 1>}, {transform_indices = @transform_7, window_bounds = array<i64: 1, 256>}]} {
    %c0 = arith.constant 0 : index
    %c0_0 = arith.constant 0 : index
    %0 = vector.load %arg2[%c0, %c0_0] : memref<64x3xf32, #tpu.memory_space<vmem>>, vector<64x3xf32>
    %c0_1 = arith.constant 0 : index
    %c0_2 = arith.constant 0 : index
    %1 = vector.load %arg1[%c0_1, %c0_2] : memref<256x3xf32, #tpu.memory_space<vmem>>, vector<256x3xf32>
    %cst = arith.constant dense<0.000000e+00> : vector<64x256xf32>
    %2 = tpu.matmul %0, %1, %cst {dimension_numbers = #tpu.dot_dimension_numbers<[1], [1], [0], [0], [0, 0, 1, 0], [], []>} : vector<64x3xf32>, vector<256x3xf32>, vector<64x256xf32> -> vector<64x256xf32>
    %c0_3 = arith.constant 0 : index
    %c0_4 = arith.constant 0 : index
    %3 = vector.load %arg3[%c0_3, %c0_4] : memref<64x1xf32, #tpu.memory_space<vmem>>, vector<64x1xf32>
    %4 = vector.broadcast %3 : vector<64x1xf32> to vector<64x256xf32>
    %5 = arith.addf %2, %4 : vector<64x256xf32>
    %cst_5 = arith.constant 0.000000e+00 : f32
    %6 = vector.broadcast %cst_5 : f32 to vector<64x256xf32>
    %7 = arith.cmpf ogt, %5, %6 : vector<64x256xf32>
    %cst_6 = arith.constant 0.00999999977 : f32
    %8 = vector.broadcast %cst_6 : f32 to vector<64x256xf32>
    %9 = arith.mulf %8, %5 : vector<64x256xf32>
    %10 = arith.select %7, %5, %9 : vector<64x256xi1>, vector<64x256xf32>
    %c0_7 = arith.constant 0 : index
    %c0_8 = arith.constant 0 : index
    %11 = vector.load %arg4[%c0_7, %c0_8] : memref<64x64xf32, #tpu.memory_space<vmem>>, vector<64x64xf32>
    %cst_9 = arith.constant dense<0.000000e+00> : vector<64x256xf32>
    %12 = tpu.matmul %11, %10, %cst_9 {dimension_numbers = #tpu.dot_dimension_numbers<[1], [0], [0], [1], [0, 0, 1, 1], [], []>} : vector<64x64xf32>, vector<64x256xf32>, vector<64x256xf32> -> vector<64x256xf32>
    %c0_10 = arith.constant 0 : index
    %c0_11 = arith.constant 0 : index
    %13 = vector.load %arg5[%c0_10, %c0_11] : memref<64x1xf32, #tpu.memory_space<vmem>>, vector<64x1xf32>
    %14 = vector.broadcast %13 : vector<64x1xf32> to vector<64x256xf32>
    %15 = arith.addf %12, %14 : vector<64x256xf32>
    %cst_12 = arith.constant 0.000000e+00 : f32
    %16 = vector.broadcast %cst_12 : f32 to vector<64x256xf32>
    %17 = arith.cmpf ogt, %15, %16 : vector<64x256xf32>
    %cst_13 = arith.constant 0.00999999977 : f32
    %18 = vector.broadcast %cst_13 : f32 to vector<64x256xf32>
    %19 = arith.mulf %18, %15 : vector<64x256xf32>
    %20 = arith.select %17, %15, %19 : vector<64x256xi1>, vector<64x256xf32>
    %c0_14 = arith.constant 0 : index
    %c0_15 = arith.constant 0 : index
    %21 = vector.load %arg6[%c0_14, %c0_15] : memref<64x1xf32, #tpu.memory_space<vmem>>, vector<64x1xf32>
    %22 = vector.broadcast %21 : vector<64x1xf32> to vector<64x256xf32>
    %23 = arith.mulf %20, %22 : vector<64x256xf32>
    %cst_16 = arith.constant dense<0.000000e+00> : vector<256xf32>
    %24 = vector.multi_reduction <add>, %23, %cst_16 [0] : vector<64x256xf32> to vector<256xf32>
    %25 = vector.shape_cast %24 : vector<256xf32> to vector<1x256xf32>
    %c0_17 = arith.constant 0 : index
    %c0_18 = arith.constant 0 : index
    %26 = vector.load %arg7[%c0_17, %c0_18] : memref<1x1xf32, #tpu.memory_space<vmem>>, vector<1x1xf32>
    %27 = vector.broadcast %26 : vector<1x1xf32> to vector<1x256xf32>
    %28 = arith.addf %25, %27 : vector<1x256xf32>
    %c0_19 = arith.constant 0 : index
    %c0_20 = arith.constant 0 : index
    %29 = vector.load %arg8[%c0_19, %c0_20] : memref<1x256xf32, #tpu.memory_space<vmem>>, vector<1x256xf32>
    tpu.vector_store %arg8[%c0_19, %c0_20], %28 {strides = array<i32>} : memref<1x256xf32, #tpu.memory_space<vmem>>, vector<1x256xf32>,
    return
  }
  func.func @transform_0(%arg0: i32) -> (i32, i32) {
    %c0_i32 = arith.constant 0 : i32
    %c0_i32_0 = arith.constant 0 : i32
    return %arg0, %c0_i32 : i32, i32
  }
  func.func @transform_1(%arg0: i32) -> (i32, i32) {
    %c0_i32 = arith.constant 0 : i32
    %c0_i32_0 = arith.constant 0 : i32
    %c0_i32_1 = arith.constant 0 : i32
    return %c0_i32, %c0_i32_0 : i32, i32
  }
  func.func @transform_2(%arg0: i32) -> (i32, i32) {
    %c0_i32 = arith.constant 0 : i32
    %c0_i32_0 = arith.constant 0 : i32
    %c0_i32_1 = arith.constant 0 : i32
    return %c0_i32, %c0_i32_0 : i32, i32
  }
  func.func @transform_3(%arg0: i32) -> (i32, i32) {
    %c0_i32 = arith.constant 0 : i32
    %c0_i32_0 = arith.constant 0 : i32
    %c0_i32_1 = arith.constant 0 : i32
    return %c0_i32, %c0_i32_0 : i32, i32
  }
  func.func @transform_4(%arg0: i32) -> (i32, i32) {
    %c0_i32 = arith.constant 0 : i32
    %c0_i32_0 = arith.constant 0 : i32
    %c0_i32_1 = arith.constant 0 : i32
    return %c0_i32, %c0_i32_0 : i32, i32
  }
  func.func @transform_5(%arg0: i32) -> (i32, i32) {
    %c0_i32 = arith.constant 0 : i32
    %c0_i32_0 = arith.constant 0 : i32
    %c0_i32_1 = arith.constant 0 : i32
    return %c0_i32, %c0_i32_0 : i32, i32
  }
  func.func @transform_6(%arg0: i32) -> (i32, i32) {
    %c0_i32 = arith.constant 0 : i32
    %c0_i32_0 = arith.constant 0 : i32
    %c0_i32_1 = arith.constant 0 : i32
    return %c0_i32, %c0_i32_0 : i32, i32
  }
  func.func @transform_7(%arg0: i32) -> (i32, i32) {
    %c0_i32 = arith.constant 0 : i32
    %c0_i32_0 = arith.constant 0 : i32
    return %c0_i32, %arg0 : i32, i32
  }
}

</mosaic_0001>

<bundles_post_ra>
// kernel: critic_forward.1
= control target key start
LH: loop header
LB: loop body
LE: loop exit
PB: predicated region body
PF: predicated region fallthrough
CT: control target
= control target key end

     0   :  { %s1306_s26 = smov 0   ;;  %s1555_s0 = inlined_call_operand.vmem [shape: f32[512,3], index: 0, kind: input, shape index: {}]   ;;  %s1556_s1 = inlined_call_operand.vmem [shape: f32[64,3], index: 1, kind: input, shape index: {}]   ;;  %s1557_s2 = inlined_call_operand.vmem [shape: f32[64,1], index: 2, kind: input, shape index: {}]   ;;  %s1558_s3 = inlined_call_operand.vmem [shape: f32[64,64], index: 3, kind: input, shape index: {}]   ;;  %s1559_s4 = inlined_call_operand.vmem [shape: f32[64,1], index: 4, kind: input, shape index: {}]   ;;  %s1560_s5 = inlined_call_operand.vmem [shape: f32[64,1], index: 5, kind: input, shape index: {}]   ;;  %s1561_s6 = inlined_call_operand.<no memory space> [shape: f32[1,1], index: 6, kind: input, shape index: {}]   ;;  %s1562_s7 = inlined_call_operand.vmem [shape: f32[1,512], index: 7, kind: output, shape index: {}]  }
   0x1   :  { %v12_v0 = vstv %s1561_s6 }
   0x2   :  { %13 = vst [vmem:[#allocation2] sm:$0x1] %v12_v0 }
   0x3 LB: > { %s1069_s27 = sadd.s32 4294967295, %s1258_s26   ;;  %p1073_p0 = scmp.ge.s32.totalorder %s1258_s26, 1  ;;  %s1258_s26 = sphi %s1306_s26, %s19_s26  }
   0x4   : > { %p240_p1 = scmp.lt.s32.totalorder %s1258_s26, 3 }
   0x6   : > { %p241_p2 = pnand %p1073_p0, %p240_p1 }
   0x7   : > { %s1074_s28 = sshll.u32 (!%p241_p2), %s1069_s27, 5  ;;  %vm370_vm0 = vcmask (!%p241_p2), 23552   ;;  %v1319_v1 = vld [vmem:[%s1556_s1] sm:$0xff] (!%p241_p2)  ;;  %v1260_v2 = vmov (!%p241_p2), 0   ;;  %v324_v4 = vld [vmem:[%s1557_s2 + $0x10] sm:$0xff] (!%p241_p2)  ;;  %v323_v5 = vld [vmem:[%s1557_s2 + $0x8] sm:$0xff] (!%p241_p2) }
   0x8   : > { %244 = sbr.rel (%p241_p2) target bundleno = 608 (0x260), region = 48  ;;  %p272_p3 = scmp.lt.s32.totalorder (!%p241_p2), %s1074_s28, 63  ;;  %1159 = vmatprep.mubr.msk.f32.mxu0 (!%p241_p2), %vm370_vm0, %v1319_v1  ;;  %1250 = vset.pattern.permute.xlu0 (!%p241_p2), %v1260_v2  ;;  %v322_v3 = vld [vmem:[%s1557_s2] sm:$0xff] (!%p241_p2)  ;;  %v325_v6 = vld [vmem:[%s1557_s2 + $0x18] sm:$0xff] (!%p241_p2)  ;;  %vm1342_vm1 = vmpackc.low (!%p241_p2), %vm370_vm0, %vm370_vm0 }
   0x9   : > { %1251 = vset.pattern.permute.xlu1 (!%p241_p2), %v1260_v2  ;;  %332 = vperm.xlu0 (!%p241_p2), %1250, %v322_v3   ;;  %v326_v17 = vld [vmem:[%s1557_s2 + $0x20] sm:$0xff] (!%p241_p2)  ;;  %v327_v18 = vld [vmem:[%s1557_s2 + $0x28] sm:$0xff] (!%p241_p2)  ;;  %v328_v23 = vld [vmem:[%s1557_s2 + $0x30] sm:$0xff] (!%p241_p2)  ;;  %s1076_s24 = sshll.u32 (!%p241_p2), %s1069_s27, 1 }
   0xa   : > { %342 = vperm.xlu1 (!%p241_p2), %1251, %v324_v4   ;;  %v329_v24 = vld [vmem:[%s1557_s2 + $0x38] sm:$0xff] (!%p241_p2)  ;;  %v660_v27 = vld [vmem:[%s1559_s4] sm:$0xff] (!%p241_p2)  ;;  %v661_v28 = vld [vmem:[%s1559_s4 + $0x8] sm:$0xff] (!%p241_p2)  ;;  %p278_p4 = scmp.lt.s32.totalorder (!%p241_p2), %s1076_s24, 3 }
   0xb   : > { %v662_v33 = vld [vmem:[%s1559_s4 + $0x10] sm:$0xff] (!%p241_p2)  ;;  %v663_v34 = vld [vmem:[%s1559_s4 + $0x18] sm:$0xff] (!%p241_p2)  ;;  %v894_v37 = vld [vmem:[%s1560_s5] sm:$0xff] (!%p241_p2) }
   0xc   : > { %v895_v38 = vld [vmem:[%s1560_s5 + $0x8] sm:$0xff] (!%p241_p2)  ;;  %v664_v43 = vld [vmem:[%s1559_s4 + $0x20] sm:$0xff] (!%p241_p2)  ;;  %v896_v44 = vld [vmem:[%s1560_s5 + $0x10] sm:$0xff] (!%p241_p2) }
   0xd   : > { %337 = vperm.xlu0 (!%p241_p2), %1250, %v323_v5   ;;  %v665_v47 = vld [vmem:[%s1559_s4 + $0x28] sm:$0xff] (!%p241_p2)  ;;  %v897_v48 = vld [vmem:[%s1560_s5 + $0x18] sm:$0xff] (!%p241_p2)  ;;  %v666_v53 = vld [vmem:[%s1559_s4 + $0x30] sm:$0xff] (!%p241_p2) }
   0xe   : > { %347 = vperm.xlu1 (!%p241_p2), %1251, %v325_v6   ;;  %v898_v54 = vld [vmem:[%s1560_s5 + $0x20] sm:$0xff] (!%p241_p2)  ;;  %v667_v57 = vld [vmem:[%s1559_s4 + $0x38] sm:$0xff] (!%p241_p2)  ;;  %v899_v58 = vld [vmem:[%s1560_s5 + $0x28] sm:$0xff] (!%p241_p2) }
   0xf   : > { %s1566_s28 = smov (!%p272_p3, %s1074_s28), 63  ;;  %v900_v63 = vld [vmem:[%s1560_s5 + $0x30] sm:$0xff]  ;;  %v901_v0 = vld [vmem:[%s1560_s5 + $0x38] sm:$0xff]  ;;  %v984_v4 = vld [vmem:[#allocation2] sm:$0x1]  ;;  %s1568_s24 = smov (!%p278_p4, %s1076_s24), 3 }
  0x10   : > { %s1075_s11 = sshll.u32 %s1566_s28, 3  ;;  %v285_v7 = vld [vmem:[%s1556_s1 + $0x18] sm:$0xff]  ;;  %s280_s6 = scalar_lea.vmem %s1562_s7, %s1568_s24 }
  0x11   : > { %s1338_s18 = scalar_lea.vmem %s1555_s0, %s1075_s11  ;;  %352 = vperm.xlu0 %1250, %v326_v17   ;;  %v287_v17 = vld [vmem:[%s1556_s1 + $0x28] sm:$0xff] }
  0x12   : > { %v306_v8 = vld [vmem:[%s1338_s18 + $0x80] sm:$0xff]  ;;  %v307_v9 = vld [vmem:[%s1338_s18 + $0x88] sm:$0xff]  ;;  %v308_v13 = vld [vmem:[%s1338_s18 + $0x90] sm:$0xff]  ;;  %357 = vperm.xlu1 %1251, %v327_v18  }
  0x13   : > { %v290_v10 = vld [vmem:[%s1338_s18] sm:$0xff]  ;;  %v1175_v11 = vpack.c.bf16 %v307_v9, %v306_v8  ;;  %v291_v12 = vld [vmem:[%s1338_s18 + $0x8] sm:$0xff]  ;;  %v309_v14 = vld [vmem:[%s1338_s18 + $0x98] sm:$0xff] }
  0x14   : > { %v1178_v15 = vpack.c.bf16 %v291_v12, %v290_v10  ;;  %v1181_v16 = vpack.c.bf16 %v309_v14, %v308_v13  ;;  %v292_v19 = vld [vmem:[%s1338_s18 + $0x10] sm:$0xff]  ;;  %v293_v20 = vld [vmem:[%s1338_s18 + $0x18] sm:$0xff]  ;;  %v310_v21 = vld [vmem:[%s1338_s18 + $0xa0] sm:$0xff] }
  0x15   : > { %1177 = vmatprep.subr.msk.bf16.mxu0 %vm1342_vm1, %v1175_v11  ;;  %v311_v22 = vld [vmem:[%s1338_s18 + $0xa8] sm:$0xff]  ;;  %v1184_v25 = vpack.c.bf16 %v293_v20, %v292_v19  ;;  %362 = vperm.xlu0 %1250, %v328_v23   ;;  %v294_v29 = vld [vmem:[%s1338_s18 + $0x20] sm:$0xff]  ;;  %v312_v31 = vld [vmem:[%s1338_s18 + $0xb0] sm:$0xff]  ;;  %v1261_v20 = vmov 0.0  }
  0x16   : > { %1180 = vmatpush3.bf16.xpose.msk.msra.mxu0 %vm1342_vm1, %v1178_v15  ;;  %v1187_v26 = vpack.c.bf16 %v311_v22, %v310_v21  ;;  %367 = vperm.xlu1 %1251, %v329_v24   ;;  %v295_v30 = vld [vmem:[%s1338_s18 + $0x28] sm:$0xff]  ;;  %v313_v32 = vld [vmem:[%s1338_s18 + $0xb8] sm:$0xff]  ;;  %v296_v39 = vld [vmem:[%s1338_s18 + $0x30] sm:$0xff] }
  0x17   : > { %1183 = vmatprep.subr.msk.bf16.mxu0 %vm1342_vm1, %v1181_v16  ;;  %v1190_v35 = vpack.c.bf16 %v295_v30, %v294_v29  ;;  %v1193_v36 = vpack.c.bf16 %v313_v32, %v312_v31  ;;  %v297_v40 = vld [vmem:[%s1338_s18 + $0x38] sm:$0xff]  ;;  %v314_v41 = vld [vmem:[%s1338_s18 + $0xc0] sm:$0xff]  ;;  %v315_v42 = vld [vmem:[%s1338_s18 + $0xc8] sm:$0xff]  ;;  %797 = vmatprep.mubr.f32.mxu1 %v1261_v20 }
  0x18   : > { %v1196_v45 = vpack.c.bf16 %v297_v40, %v296_v39  ;;  %v1199_v46 = vpack.c.bf16 %v315_v42, %v314_v41  ;;  %v298_v49 = vld [vmem:[%s1338_s18 + $0x40] sm:$0xff]  ;;  %v299_v50 = vld [vmem:[%s1338_s18 + $0x48] sm:$0xff]  ;;  %v316_v51 = vld [vmem:[%s1338_s18 + $0xd0] sm:$0xff] }
  0x19   : > { %670 = vperm.xlu0 %1250, %v660_v27   ;;  %v317_v52 = vld [vmem:[%s1338_s18 + $0xd8] sm:$0xff]  ;;  %v1202_v55 = vpack.c.bf16 %v299_v50, %v298_v49  ;;  %v300_v59 = vld [vmem:[%s1338_s18 + $0x50] sm:$0xff]  ;;  %v318_v61 = vld [vmem:[%s1338_s18 + $0xe0] sm:$0xff] }
  0x1a   : > { %675 = vperm.xlu1 %1251, %v661_v28   ;;  %v1205_v56 = vpack.c.bf16 %v317_v52, %v316_v51  ;;  %v301_v60 = vld [vmem:[%s1338_s18 + $0x58] sm:$0xff]  ;;  %v319_v62 = vld [vmem:[%s1338_s18 + $0xe8] sm:$0xff]  ;;  %v302_v5 = vld [vmem:[%s1338_s18 + $0x60] sm:$0xff] }
  0x1b   : > { %v1208_v2 = vpack.c.bf16 %v301_v60, %v300_v59  ;;  %v1211_v3 = vpack.c.bf16 %v319_v62, %v318_v61  ;;  %v303_v6 = vld [vmem:[%s1338_s18 + $0x68] sm:$0xff]  ;;  %v320_v8 = vld [vmem:[%s1338_s18 + $0xf0] sm:$0xff]  ;;  %v321_v9 = vld [vmem:[%s1338_s18 + $0xf8] sm:$0xff] }
  0x1c   : > { %v1214_v10 = vpack.c.bf16 %v303_v6, %v302_v5  ;;  %v1217_v11 = vpack.c.bf16 %v321_v9, %v320_v8  ;;  %v304_v12 = vld [vmem:[%s1338_s18 + $0x70] sm:$0xff]  ;;  %v305_v13 = vld [vmem:[%s1338_s18 + $0x78] sm:$0xff]  ;;  %v283_v15 = vld [vmem:[%s1556_s1 + $0x8] sm:$0xff] }
  0x1d   : > { %680 = vperm.xlu0 %1250, %v662_v33   ;;  %v1220_v14 = vpack.c.bf16 %v305_v13, %v304_v12  ;;  %v284_v16 = vld [vmem:[%s1556_s1 + $0x10] sm:$0xff]  ;;  %v289_v19 = vld [vmem:[%s1556_s1 + $0x38] sm:$0xff] }
  0x1e   : > { %1186 = vmatpush3.bf16.xpose.msk.msra.mxu0 %vm1342_vm1, %v1184_v25  ;;  %685 = vperm.xlu1 %1251, %v663_v34   ;;  %v288_v18 = vld [vmem:[%s1556_s1 + $0x30] sm:$0xff] }
  0x1f   : > { %1189 = vmatprep.subr.msk.bf16.mxu0 %vm1342_vm1, %v1187_v26 }
  0x21   : > { %904 = vperm.xlu0 %1250, %v894_v37  }
  0x22   : > { %909 = vperm.xlu1 %1251, %v895_v38  }
  0x25   : > { %690 = vperm.xlu0 %1250, %v664_v43  }
  0x26   : > { %1192 = vmatpush3.bf16.xpose.msk.msra.mxu0 %vm1342_vm1, %v1190_v35  ;;  %914 = vperm.xlu1 %1251, %v896_v44  }
  0x27   : > { %1195 = vmatprep.subr.msk.bf16.mxu0 %vm1342_vm1, %v1193_v36 }
  0x29   : > { %695 = vperm.xlu0 %1250, %v665_v47  }
  0x2a   : > { %919 = vperm.xlu1 %1251, %v897_v48  }
  0x2d   : > { %700 = vperm.xlu0 %1250, %v666_v53  }
  0x2e   : > { %1198 = vmatpush3.bf16.xpose.msk.msra.mxu0 %vm1342_vm1, %v1196_v45  ;;  %924 = vperm.xlu1 %1251, %v898_v54  }
  0x2f   : > { %1201 = vmatprep.subr.msk.bf16.mxu0 %vm1342_vm1, %v1199_v46 }
  0x31   : > { %705 = vperm.xlu0 %1250, %v667_v57  }
  0x32   : > { %929 = vperm.xlu1 %1251, %v899_v58  }
  0x35   : > { %934 = vperm.xlu0 %1250, %v900_v63  }
  0x36   : > { %1204 = vmatpush3.bf16.xpose.msk.msra.mxu0 %vm1342_vm1, %v1202_v55  ;;  %939 = vperm.xlu1 %1251, %v901_v0  }
  0x37   : > { %1207 = vmatprep.subr.msk.bf16.mxu0 %vm1342_vm1, %v1205_v56 }
  0x39   : > { %987 = vperm.xlu0 %1250, %v984_v4  }
  0x3e   : > { %1210 = vmatpush3.bf16.xpose.msk.msra.mxu0 %vm1342_vm1, %v1208_v2 }
  0x3f   : > { %1213 = vmatprep.subr.msk.bf16.mxu0 %vm1342_vm1, %v1211_v3 }
  0x46   : > { %1216 = vmatpush3.bf16.xpose.msk.msra.mxu0 %vm1342_vm1, %v1214_v10 }
  0x47   : > { %1219 = vmatprep.subr.msk.bf16.mxu0 %vm1342_vm1, %v1217_v11 }
  0x4e   : > { %1222 = vmatpush3.bf16.xpose.msk.msra.mxu0 %vm1342_vm1, %v1220_v14 }
  0x55   : > { %1160 = vmatmul.mubr.msk.f32.vlgmr.msra.gmra.mrb[0].mxu0 %vm370_vm0, %v1319_v1  ;;  %v286_v1 = vld [vmem:[%s1556_s1 + $0x20] sm:$0xff] }
  0x56   : > { %1161 = vmatprep.mubr.msk.f32.mxu0 %vm370_vm0, %v283_v15 }
  0x59   : > { %1162 = vmatmul.mubr.msk.f32.gmra.mrb[2].mxu0 %vm370_vm0, %v283_v15 }
  0x5a   : > { %1163 = vmatprep.mubr.msk.f32.mxu0 %vm370_vm0, %v284_v16 }
  0x5d   : > { %1164 = vmatmul.mubr.msk.f32.gmra.mrb[4].mxu0 %vm370_vm0, %v284_v16 }
  0x5e   : > { %1165 = vmatprep.mubr.msk.f32.mxu0 %vm370_vm0, %v285_v7 }
  0x61   : > { %1166 = vmatmul.mubr.msk.f32.gmra.mrb[6].mxu0 %vm370_vm0, %v285_v7 }
  0x62   : > { %1167 = vmatprep.mubr.msk.f32.mxu0 %vm370_vm0, %v286_v1 }
  0x65   : > { %1168 = vmatmul.mubr.msk.f32.gmra.mrb[8].mxu0 %vm370_vm0, %v286_v1 }
  0x66   : > { %1169 = vmatprep.mubr.msk.f32.mxu0 %vm370_vm0, %v287_v17 }
  0x69   : > { %1170 = vmatmul.mubr.msk.f32.gmra.mrb[10].mxu0 %vm370_vm0, %v287_v17 }
  0x6a   : > { %1171 = vmatprep.mubr.msk.f32.mxu0 %vm370_vm0, %v288_v18 }
  0x6d   : > { %1172 = vmatmul.mubr.msk.f32.gmra.mrb[12].mxu0 %vm370_vm0, %v288_v18 }
  0x6e   : > { %1173 = vmatprep.mubr.msk.f32.mxu0 %vm370_vm0, %v289_v19 }
  0x71   : > { %1174 = vmatmul.mubr.msk.f32.gmra.mrb[14].mxu0 %vm370_vm0, %v289_v19 }
  0x88   : > { %v333_v21 = vpop.permute.xlu0 %332 }
  0x89   : > { %v343_v31 = vpop.permute.xlu1 %342 }
  0x8c   : > { %v338_v26 = vpop.permute.xlu0 %337 }
  0x8d   : > { %v348_v46 = vpop.permute.xlu1 %347 }
  0x90   : > { %v353_v54 = vpop.permute.xlu0 %352 }
  0x91   : > { %v358_v3 = vpop.permute.xlu1 %357 }
  0x94   : > { %v363_v12 = vpop.permute.xlu0 %362 }
 0x128   : > { %v557_v22 = vpop.f32.mrb[0].mxu0 }
 0x129   : > { %v558_v23 = vadd.f32 %v557_v22, %v333_v21  ;;  %v559_v24 = vpop.f32.mrb[1].mxu0 }
 0x12a   : > { %v560_v25 = vadd.f32 %v559_v24, %v333_v21 }
 0x12b   : > { %v620_v28 = vmul.f32 0.01, %v558_v23  ;;  %vm604_vm2 = vcmp.gt.f32.partialorder %v558_v23, 0.0 }
 0x12c   : > { %v563_v27 = vpop.f32.mrb[2].mxu0  ;;  %v621_v32 = vmul.f32 0.01, %v560_v25  ;;  %vm605_vm3 = vcmp.gt.f32.partialorder %v560_v25, 0.0 }
 0x12d   : > { %v564_v29 = vadd.f32 %v563_v27, %v338_v26  ;;  %v565_v30 = vpop.f32.mrb[3].mxu0  ;;  %v636_v39 = vsel %vm604_vm2, %v558_v23, %v620_v28  ;;  %v368_v23 = vpop.permute.xlu1 %367  ;;  %vm708_vm2 = vcmask 523264  }
 0x12e   : > { %v566_v33 = vadd.f32 %v565_v30, %v338_v26  ;;  %v637_v42 = vsel %vm605_vm3, %v560_v25, %v621_v32 }
 0x12f   : > { %v622_v34 = vmul.f32 0.01, %v564_v29  ;;  %vm606_vm4 = vcmp.gt.f32.partialorder %v564_v29, 0.0 }
 0x130   : > { %v623_v35 = vmul.f32 0.01, %v566_v33  ;;  %v569_v36 = vpop.f32.mrb[4].mxu0  ;;  %vm607_vm5 = vcmp.gt.f32.partialorder %v566_v33, 0.0 }
 0x131   : > { %v570_v37 = vadd.f32 %v569_v36, %v343_v31  ;;  %v571_v38 = vpop.f32.mrb[5].mxu0  ;;  %v638_v40 = vsel %vm606_vm4, %v564_v29, %v622_v34 }
 0x132   : > { %v572_v41 = vadd.f32 %v571_v38, %v343_v31  ;;  %v639_v43 = vsel %vm607_vm5, %v566_v33, %v623_v35  ;;  %v1225_v44 = vpack.c.bf16 %v638_v40, %v636_v39  ;;  %v652_v38 = vld [vmem:[%s1558_s3] sm:$0xff]  ;;  %v653_v39 = vld [vmem:[%s1558_s3 + $0x8] sm:$0xff]  ;;  %v654_v40 = vld [vmem:[%s1558_s3 + $0x10] sm:$0xff] }
 0x133   : > { %v1223_v45 = vpack.c.bf16 %v639_v43, %v637_v42  ;;  %v624_v48 = vmul.f32 0.01, %v570_v37  ;;  %vm608_vm6 = vcmp.gt.f32.partialorder %v570_v37, 0.0  ;;  %v656_v42 = vld [vmem:[%s1558_s3 + $0x20] sm:$0xff]  ;;  %v657_v43 = vld [vmem:[%s1558_s3 + $0x28] sm:$0xff] }
 0x134   : > { %v575_v47 = vpop.f32.mrb[6].mxu0  ;;  %v625_v51 = vmul.f32 0.01, %v572_v41  ;;  %vm609_vm7 = vcmp.gt.f32.partialorder %v572_v41, 0.0 }
 0x135   : > { %v576_v49 = vadd.f32 %v575_v47, %v348_v46  ;;  %v577_v50 = vpop.f32.mrb[7].mxu0  ;;  %1224 = vmatprep.subr.bf16.mxu1 %v1223_v45  ;;  %v640_v59 = vsel %vm608_vm6, %v570_v37, %v624_v48  ;;  %v659_v45 = vld [vmem:[%s1558_s3 + $0x38] sm:$0xff]  ;;  %v676_v47 = vpop.permute.xlu1 %675 }
 0x136   : > { %v578_v52 = vadd.f32 %v577_v50, %v348_v46  ;;  %1226 = vmatpush1.bf16.msra.mxu1 %v1225_v44  ;;  %v641_v62 = vsel %vm609_vm7, %v572_v41, %v625_v51  ;;  %v655_v41 = vld [vmem:[%s1558_s3 + $0x18] sm:$0xff]  ;;  %v658_v44 = vld [vmem:[%s1558_s3 + $0x30] sm:$0xff]  ;;  %v671_v46 = vpop.permute.xlu0 %670 }
 0x137   : > { %vm610_vm8 = vcmp.gt.f32.partialorder %v576_v49, 0.0  ;;  %v626_v53 = vmul.f32 0.01, %v576_v49 }
 0x138   : > { %vm611_vm9 = vcmp.gt.f32.partialorder %v578_v52, 0.0  ;;  %v627_v55 = vmul.f32 0.01, %v578_v52  ;;  %v581_v56 = vpop.f32.mrb[8].mxu0 }
 0x139   : > { %v582_v57 = vadd.f32 %v581_v56, %v353_v54  ;;  %v583_v58 = vpop.f32.mrb[9].mxu0  ;;  %v642_v60 = vsel %vm610_vm8, %v576_v49, %v626_v53  ;;  %v686_v49 = vpop.permute.xlu1 %685 }
 0x13a   : > { %v584_v61 = vadd.f32 %v583_v58, %v353_v54  ;;  %v643_v63 = vsel %vm611_vm9, %v578_v52, %v627_v55  ;;  %v1229_v0 = vpack.c.bf16 %v642_v60, %v640_v59  ;;  %v681_v48 = vpop.permute.xlu0 %680 }
 0x13b   : > { %v1227_v2 = vpack.c.bf16 %v643_v63, %v641_v62  ;;  %v628_v5 = vmul.f32 0.01, %v582_v57  ;;  %vm612_vm10 = vcmp.gt.f32.partialorder %v582_v57, 0.0 }
 0x13c   : > { %v587_v4 = vpop.f32.mrb[10].mxu0  ;;  %v629_v9 = vmul.f32 0.01, %v584_v61  ;;  %vm613_vm11 = vcmp.gt.f32.partialorder %v584_v61, 0.0 }
 0x13d   : > { %v588_v6 = vadd.f32 %v587_v4, %v358_v3  ;;  %v589_v8 = vpop.f32.mrb[11].mxu0  ;;  %1228 = vmatprep.subr.bf16.mxu1 %v1227_v2  ;;  %v644_v7 = vsel %vm612_vm10, %v582_v57, %v628_v5  ;;  %v910_v52 = vpop.permute.xlu1 %909 }
 0x13e   : > { %v590_v10 = vadd.f32 %v589_v8, %v358_v3  ;;  %1230 = vmatpush1.bf16.msra.mxu1 %v1229_v0  ;;  %v645_v18 = vsel %vm613_vm11, %v584_v61, %v629_v9  ;;  %v905_v50 = vpop.permute.xlu0 %904 }
 0x13f   : > { %vm614_vm12 = vcmp.gt.f32.partialorder %v588_v6, 0.0  ;;  %v630_v11 = vmul.f32 0.01, %v588_v6 }
 0x140   : > { %vm615_vm13 = vcmp.gt.f32.partialorder %v590_v10, 0.0  ;;  %v631_v13 = vmul.f32 0.01, %v590_v10  ;;  %v593_v14 = vpop.f32.mrb[12].mxu0 }
 0x141   : > { %v594_v15 = vadd.f32 %v593_v14, %v363_v12  ;;  %v595_v16 = vpop.f32.mrb[13].mxu0  ;;  %v646_v1 = vsel %vm614_vm12, %v588_v6, %v630_v11  ;;  %v915_v62 = vpop.permute.xlu1 %914 }
 0x142   : > { %v596_v17 = vadd.f32 %v595_v16, %v363_v12  ;;  %v647_v19 = vsel %vm615_vm13, %v590_v10, %v631_v13  ;;  %v1233_v21 = vpack.c.bf16 %v646_v1, %v644_v7  ;;  %v691_v58 = vpop.permute.xlu0 %690 }
 0x143   : > { %v1231_v22 = vpack.c.bf16 %v647_v19, %v645_v18  ;;  %v632_v25 = vmul.f32 0.01, %v594_v15  ;;  %vm616_vm14 = vcmp.gt.f32.partialorder %v594_v15, 0.0 }
 0x144   : > { %v599_v24 = vpop.f32.mrb[14].mxu0  ;;  %v633_v28 = vmul.f32 0.01, %v596_v17  ;;  %vm617_vm15 = vcmp.gt.f32.partialorder %v596_v17, 0.0 }
 0x145   : > { %v600_v26 = vadd.f32 %v599_v24, %v368_v23  ;;  %v601_v27 = vpop.f32.mrb[15].mxu0  ;;  %1232 = vmatprep.subr.bf16.mxu1 %v1231_v22  ;;  %v648_v32 = vsel %vm616_vm14, %v594_v15, %v632_v25  ;;  %v920_v18 = vpop.permute.xlu1 %919 }
 0x146   : > { %v602_v29 = vadd.f32 %v601_v27, %v368_v23  ;;  %1234 = vmatpush1.bf16.msra.mxu1 %v1233_v21  ;;  %v649_v34 = vsel %vm617_vm15, %v596_v17, %v633_v28  ;;  %v696_v13 = vpop.permute.xlu0 %695 }
 0x147   : > { %vm618_vm0 = vcmp.gt.f32.partialorder %v600_v26, 0.0  ;;  %v634_v30 = vmul.f32 0.01, %v600_v26 }
 0x148   : > { %vm619_vm1 = vcmp.gt.f32.partialorder %v602_v29, 0.0  ;;  %v635_v31 = vmul.f32 0.01, %v602_v29 }
 0x149   : > { %v650_v33 = vsel %vm618_vm0, %v600_v26, %v634_v30 }
 0x14a   : > { %v651_v35 = vsel %vm619_vm1, %v602_v29, %v635_v31  ;;  %v1237_v36 = vpack.c.bf16 %v650_v33, %v648_v32  ;;  %v701_v32 = vpop.permute.xlu0 %700 }
 0x14b   : > { %v1235_v37 = vpack.c.bf16 %v651_v35, %v649_v34 }
 0x14d   : > { %1236 = vmatprep.subr.bf16.mxu1 %v1235_v37 }
 0x14e   : > { %1238 = vmatpush1.bf16.msra.mxu1 %v1237_v36 }
 0x151   : > { %1117 = vmatmul.mubr.msk.f32.vlgmr.msra.gmra.mrb[0].mxu1 %vm708_vm2, %v652_v38 }
 0x152   : > { %803 = vmatprep.mubr.f32.mxu1 %v1261_v20 }
 0x155   : > { %1118 = vmatmul.mubr.msk.f32.gmra.mrb[2].mxu1 %vm708_vm2, %v653_v39 }
 0x156   : > { %809 = vmatprep.mubr.f32.mxu1 %v1261_v20 }
 0x159   : > { %1119 = vmatmul.mubr.msk.f32.gmra.mrb[4].mxu1 %vm708_vm2, %v654_v40  ;;  %v925_v40 = vpop.permute.xlu1 %924 }
 0x15a   : > { %815 = vmatprep.mubr.f32.mxu1 %v1261_v20 }
 0x15d   : > { %1120 = vmatmul.mubr.msk.f32.gmra.mrb[6].mxu1 %vm708_vm2, %v655_v41 }
 0x15e   : > { %821 = vmatprep.mubr.f32.mxu1 %v1261_v20 }
 0x161   : > { %1121 = vmatmul.mubr.msk.f32.gmra.mrb[8].mxu1 %vm708_vm2, %v656_v42 }
 0x162   : > { %827 = vmatprep.mubr.f32.mxu1 %v1261_v20 }
 0x165   : > { %1122 = vmatmul.mubr.msk.f32.gmra.mrb[10].mxu1 %vm708_vm2, %v657_v43 }
 0x166   : > { %833 = vmatprep.mubr.f32.mxu1 %v1261_v20 }
 0x169   : > { %1123 = vmatmul.mubr.msk.f32.gmra.mrb[12].mxu1 %vm708_vm2, %v658_v44 }
 0x16a   : > { %839 = vmatprep.mubr.f32.mxu1 %v1261_v20 }
 0x16d   : > { %1124 = vmatmul.mubr.msk.f32.gmra.mrb[14].mxu1 %vm708_vm2, %v659_v45 }
 0x224   : > { %v799_v51 = vpop.f32.mrb[0].mxu1 }
 0x225   : > { %v800_v53 = vadd.f32 %v799_v51, %v671_v46  ;;  %v801_v54 = vpop.f32.mrb[1].mxu1 }
 0x226   : > { %v802_v55 = vadd.f32 %v801_v54, %v671_v46 }
 0x227   : > { %v862_v56 = vmul.f32 0.01, %v800_v53  ;;  %vm846_vm3 = vcmp.gt.f32.partialorder %v800_v53, 0.0 }
 0x228   : > { %v863_v57 = vmul.f32 0.01, %v802_v55  ;;  %v805_v20 = vpop.f32.mrb[2].mxu1  ;;  %vm847_vm4 = vcmp.gt.f32.partialorder %v802_v55, 0.0 }
 0x229   : > { %v806_v59 = vadd.f32 %v805_v20, %v676_v47  ;;  %v807_v60 = vpop.f32.mrb[3].mxu1  ;;  %v878_v63 = vsel %vm846_vm3, %v800_v53, %v862_v56  ;;  %v706_v53 = vpop.permute.xlu0 %705 }
 0x22a   : > { %v808_v61 = vadd.f32 %v807_v60, %v676_v47  ;;  %v879_v2 = vsel %vm847_vm4, %v802_v55, %v863_v57  ;;  %v942_v9 = vmul.f32 %v905_v50, %v878_v63 }
 0x22b   : > { %vm848_vm5 = vcmp.gt.f32.partialorder %v806_v59, 0.0  ;;  %v864_v0 = vmul.f32 0.01, %v806_v59  ;;  %v943_v14 = vmul.f32 %v905_v50, %v879_v2 }
 0x22c   : > { %vm849_vm6 = vcmp.gt.f32.partialorder %v808_v61, 0.0  ;;  %v865_v3 = vmul.f32 0.01, %v808_v61  ;;  %v811_v4 = vpop.f32.mrb[4].mxu1 }
 0x22d   : > { %v880_v5 = vsel %vm848_vm5, %v806_v59, %v864_v0  ;;  %v812_v6 = vadd.f32 %v811_v4, %v681_v48  ;;  %v813_v8 = vpop.f32.mrb[5].mxu1 }
 0x22e   : > { %v944_v10 = vmul.f32 %v910_v52, %v880_v5  ;;  %v881_v11 = vsel %vm849_vm6, %v808_v61, %v865_v3  ;;  %v814_v12 = vadd.f32 %v813_v8, %v681_v48 }
 0x22f   : > { %v945_v15 = vmul.f32 %v910_v52, %v881_v11  ;;  %vm850_vm7 = vcmp.gt.f32.partialorder %v812_v6, 0.0  ;;  %v866_v16 = vmul.f32 0.01, %v812_v6 }
 0x230   : > { %v958_v7 = vadd.f32 %v944_v10, %v942_v9  ;;  %vm851_vm8 = vcmp.gt.f32.partialorder %v814_v12, 0.0  ;;  %v867_v1 = vmul.f32 0.01, %v814_v12  ;;  %v817_v17 = vpop.f32.mrb[6].mxu1  ;;  %v935_v9 = vpop.permute.xlu0 %934 }
 0x231   : > { %v971_v19 = vadd.f32 %v945_v15, %v943_v14  ;;  %v882_v21 = vsel %vm850_vm7, %v812_v6, %v866_v16  ;;  %v818_v22 = vadd.f32 %v817_v17, %v686_v49  ;;  %v819_v23 = vpop.f32.mrb[7].mxu1 }
 0x232   : > { %v946_v24 = vmul.f32 %v915_v62, %v882_v21  ;;  %v883_v25 = vsel %vm851_vm8, %v814_v12, %v867_v1  ;;  %v820_v26 = vadd.f32 %v819_v23, %v686_v49 }
 0x233   : > { %v947_v27 = vmul.f32 %v915_v62, %v883_v25  ;;  %vm852_vm9 = vcmp.gt.f32.partialorder %v818_v22, 0.0  ;;  %v868_v28 = vmul.f32 0.01, %v818_v22 }
 0x234   : > { %v959_v29 = vadd.f32 %v958_v7, %v946_v24  ;;  %vm853_vm10 = vcmp.gt.f32.partialorder %v820_v26, 0.0  ;;  %v869_v30 = vmul.f32 0.01, %v820_v26  ;;  %v823_v31 = vpop.f32.mrb[8].mxu1 }
 0x235   : > { %v972_v33 = vadd.f32 %v971_v19, %v947_v27  ;;  %v884_v34 = vsel %vm852_vm9, %v818_v22, %v868_v28  ;;  %v824_v35 = vadd.f32 %v823_v31, %v691_v58  ;;  %v825_v36 = vpop.f32.mrb[9].mxu1 }
 0x236   : > { %v948_v37 = vmul.f32 %v920_v18, %v884_v34  ;;  %v885_v38 = vsel %vm853_vm10, %v820_v26, %v869_v30  ;;  %v826_v39 = vadd.f32 %v825_v36, %v691_v58  ;;  %v930_v58 = vpop.permute.xlu1 %929  ;;  %v990_v26 = vlaneseq }
 0x237   : > { %v949_v41 = vmul.f32 %v920_v18, %v885_v38  ;;  %vm854_vm11 = vcmp.gt.f32.partialorder %v824_v35, 0.0  ;;  %v870_v42 = vmul.f32 0.01, %v824_v35 }
 0x238   : > { %v960_v43 = vadd.f32 %v959_v29, %v948_v37  ;;  %vm855_vm12 = vcmp.gt.f32.partialorder %v826_v39, 0.0  ;;  %v871_v44 = vmul.f32 0.01, %v826_v39  ;;  %v829_v45 = vpop.f32.mrb[10].mxu1  ;;  %v991_v31 = vshrl.u32 %v990_v26, 7 }
 0x239   : > { %v973_v46 = vadd.f32 %v972_v33, %v949_v41  ;;  %v886_v47 = vsel %vm854_vm11, %v824_v35, %v870_v42  ;;  %v830_v48 = vadd.f32 %v829_v45, %v696_v13  ;;  %v831_v49 = vpop.f32.mrb[11].mxu1  ;;  %v1262_v35 = vmov 1966171168  }
 0x23a   : > { %v950_v50 = vmul.f32 %v925_v40, %v886_v47  ;;  %v887_v51 = vsel %vm855_vm12, %v826_v39, %v871_v44  ;;  %v832_v52 = vadd.f32 %v831_v49, %v696_v13  ;;  %v940_v19 = vpop.permute.xlu1 %939  ;;  %v1000_v36 = vunpack.c.l.s4 %v1262_v35 }
 0x23b   : > { %v951_v54 = vmul.f32 %v925_v40, %v887_v51  ;;  %vm856_vm13 = vcmp.gt.f32.partialorder %v830_v48, 0.0  ;;  %v872_v55 = vmul.f32 0.01, %v830_v48  ;;  %v992_v38 = vsub.s32 0, %v991_v31  ;;  %v988_v40 = vpop.permute.xlu0 %987 }
 0x23c   : > { %v961_v56 = vadd.f32 %v960_v43, %v950_v50  ;;  %vm857_vm14 = vcmp.gt.f32.partialorder %v832_v52, 0.0  ;;  %v873_v57 = vmul.f32 0.01, %v832_v52  ;;  %v835_v20 = vpop.f32.mrb[12].mxu1  ;;  %v1001_v43 = vunpack.c.0.s8 %v1000_v36 }
 0x23d   : > { %v974_v59 = vadd.f32 %v973_v46, %v951_v54  ;;  %v888_v60 = vsel %vm856_vm13, %v830_v48, %v872_v55  ;;  %v836_v61 = vadd.f32 %v835_v20, %v701_v32  ;;  %v837_v62 = vpop.f32.mrb[13].mxu1  ;;  %v993_v45 = vrot.slane %v988_v40, %v992_v38 }
 0x23e   : > { %v952_v63 = vmul.f32 %v930_v58, %v888_v60  ;;  %v889_v0 = vsel %vm857_vm14, %v832_v52, %v873_v57  ;;  %v838_v2 = vadd.f32 %v837_v62, %v701_v32  ;;  %v1004_v49 = vsub.s32 %v1001_v43, %v991_v31 }
 0x23f   : > { %v953_v3 = vmul.f32 %v930_v58, %v889_v0  ;;  %vm858_vm15 = vcmp.gt.f32.partialorder %v836_v61, 0.0  ;;  %v874_v4 = vmul.f32 0.01, %v836_v61  ;;  %vm1016_vm3 = vcmp.lt.s32.totalorder %v990_v26, 256 }
 0x240   : > { %v962_v5 = vadd.f32 %v961_v56, %v952_v63  ;;  %vm859_vm0 = vcmp.gt.f32.partialorder %v838_v2, 0.0  ;;  %v875_v6 = vmul.f32 0.01, %v838_v2  ;;  %v841_v8 = vpop.f32.mrb[14].mxu1 }
 0x241   : > { %v975_v10 = vadd.f32 %v974_v59, %v953_v3  ;;  %v890_v11 = vsel %vm858_vm15, %v836_v61, %v874_v4  ;;  %v842_v12 = vadd.f32 %v841_v8, %v706_v53  ;;  %v843_v13 = vpop.f32.mrb[15].mxu1 }
 0x242   : > { %v954_v14 = vmul.f32 %v935_v9, %v890_v11  ;;  %v891_v15 = vsel %vm859_vm0, %v838_v2, %v875_v6  ;;  %v844_v16 = vadd.f32 %v843_v13, %v706_v53 }
 0x243   : > { %v955_v7 = vmul.f32 %v935_v9, %v891_v15  ;;  %vm860_vm1 = vcmp.gt.f32.partialorder %v842_v12, 0.0  ;;  %v876_v1 = vmul.f32 0.01, %v842_v12 }
 0x244   : > { %v963_v17 = vadd.f32 %v962_v5, %v954_v14  ;;  %vm861_vm2 = vcmp.gt.f32.partialorder %v844_v16, 0.0  ;;  %v877_v18 = vmul.f32 0.01, %v844_v16 }
 0x245   : > { %v976_v21 = vadd.f32 %v975_v10, %v955_v7  ;;  %v892_v22 = vsel %vm860_vm1, %v842_v12, %v876_v1 }
 0x246   : > { %v956_v23 = vmul.f32 %v940_v19, %v892_v22  ;;  %v893_v24 = vsel %vm861_vm2, %v844_v16, %v877_v18 }
 0x247   : > { %v957_v25 = vmul.f32 %v940_v19, %v893_v24 }
 0x248   : > { %v964_v27 = vadd.f32 %v963_v17, %v956_v23 }
 0x249   : > { %v977_v28 = vadd.f32 %v976_v21, %v957_v25 }
 0x24a   : > { %v965_v29 = vrot.slane %v964_v27, 4 }
 0x24b   : > { %v978_v30 = vrot.slane %v977_v28, 4 }
 0x24c   : > { %v966_v32 = vadd.f32 %v965_v29, %v964_v27 }
 0x24d   : > { %v979_v33 = vadd.f32 %v978_v30, %v977_v28 }
 0x24e   : > { %v967_v34 = vrot.slane %v966_v32, 2 }
 0x24f   : > { %v980_v37 = vrot.slane %v979_v33, 2 }
 0x250   : > { %v968_v39 = vadd.f32 %v967_v34, %v966_v32 }
 0x251   : > { %v981_v41 = vadd.f32 %v980_v37, %v979_v33 }
 0x252   : > { %v969_v42 = vrot.slane %v968_v39, 1 }
 0x253   : > { %v982_v44 = vrot.slane %v981_v41, 1 }
 0x254   : > { %v970_v46 = vadd.f32 %v969_v42, %v968_v39 }
 0x255   : > { %v983_v47 = vadd.f32 %v982_v44, %v981_v41 }
 0x256   : > { %v994_v48 = vadd.f32 %v993_v45, %v970_v46 }
 0x257   : > { %v995_v50 = vadd.f32 %v993_v45, %v983_v47 }
 0x259   : > { %v998_v51 = vcombine.low %v994_v48, %v995_v50 }
 0x25b   : > { %v1005_v52 = vrot.slane %v998_v51, %v1004_v49 }
 0x25d   : > { %v1012_v53 = vrot.slane %v1005_v52, %v1004_v49 }
 0x25f   : > { %1018 = vst.msk [vmem:[%s280_s6] sm:$0x3] %vm1016_vm3, %v1012_v53 }
 0x260 PF: > { %s19_s26 = sadd.s32 1, %s1258_s26  }
 0x261   : > { %p16_p5 = scmp.ge.s32.totalorder %s19_s26, 4  }
 0x263   :  { %18 = sbr.rel (!%p16_p5) target bundleno = 3 (0x3), region = 78 }

</bundles_post_ra>
